<compile_context>
chip_gen: v7x
topology: tpu7x:2x2x1
jax: 0.10.0
libtpu: 0.0.40
codegen_flags: <defaults>
</compile_context>

<pallas_src>
import functools
import numpy as np
import jax
import jax.numpy as jnp
from jax.experimental import pallas as pl
from jax.experimental.pallas import tpu as pltpu


_FILTER_TAPS = {
    1: [1.0],
    2: [1.0, 1.0],
    3: [1.0, 2.0, 1.0],
    4: [1.0, 3.0, 3.0, 1.0],
    5: [1.0, 4.0, 6.0, 4.0, 1.0],
    6: [1.0, 5.0, 10.0, 10.0, 5.0, 1.0],
    7: [1.0, 6.0, 15.0, 20.0, 15.0, 6.0, 1.0],
}

_UNROLL_GROUPS = 16          # fully unroll the in-kernel group loop up to here
_MAX_GROUPS_PER_STEP = 64    # bound trace size of the rolled group loop
_DMA_TARGET_BYTES = 4 << 20  # ~4 MiB input blocks: >=85% of HBM roofline


def _blur_downsample_matrix(in_size, filt_size, stride, pad_off, pad_type):
    """Dense (out_size, in_size) matrix implementing pad -> 1D blur -> stride."""
    a = np.asarray(_FILTER_TAPS[filt_size], dtype=np.float64)
    a = a / a.sum()  # separable normalization: outer(a,a)/sum(outer) == filt
    pb = int(1.0 * (filt_size - 1) / 2) + pad_off
    pa = int(np.ceil(1.0 * (filt_size - 1) / 2)) + pad_off
    padded = in_size + pb + pa
    out_size = (padded - filt_size) // stride + 1
    M = np.zeros((out_size, in_size), dtype=np.float64)
    for i in range(out_size):
        for u in range(filt_size):
            j = stride * i + u - pb  # source index in unpadded coordinates
            if j < 0:
                if pad_type in ("refl", "reflect"):
                    j = -j
                elif pad_type in ("repl", "replicate"):
                    j = 0
                elif pad_type == "zero":
                    continue
            elif j >= in_size:
                if pad_type in ("refl", "reflect"):
                    j = 2 * (in_size - 1) - j
                elif pad_type in ("repl", "replicate"):
                    j = in_size - 1
                elif pad_type == "zero":
                    continue
            if not (0 <= j < in_size):
                raise ValueError(
                    f"padding ({pb},{pa}) too large for input size {in_size} "
                    f"with pad_type={pad_type!r}")
            M[i, j] += a[u]
    return M.astype(np.float32), out_size


def _blurpool_kernel(mhbd_ref, mwt_ref, x_ref, o_ref, *, group, h_out, w_out):
    """One grid step: a block of Bc channels.

    mhbd_ref: (G*Ho, G*H)  block-diagonal H-pass matrix (grid-resident const)
    mwt_ref : (W, Wo)      W-pass matrix               (grid-resident const)
    x_ref   : (Bc, H, W)   input channel block
    o_ref   : (Bc, Ho, Wo) output channel block
    """
    bc, h, w = x_ref.shape
    g, ho, wo = group, h_out, w_out
    n_groups = bc // g

    mhbd = mhbd_ref[...]
    mwt = mwt_ref[...]

    def do_group(idx):
        off = idx * g
        if not isinstance(off, int):
            off = pl.multiple_of(off, g)
        xg = x_ref[pl.ds(off, g)]                                   # (g, H, W)
        # W pass: ONE (g*H, W) @ (W, Wo) MXU matmul.  The flatten is a free
        # sublane reinterpretation because either g == 1 or H % 8 == 0.
        y = jnp.dot(xg.reshape(g * h, w), mwt,
                    preferred_element_type=jnp.float32)             # (g*H, Wo)
        # H pass: ONE block-diagonal (g*Ho, g*H) @ (g*H, Wo) MXU matmul —
        # fills the MXU M dim instead of per-channel tiny-M matmuls.
        z = jnp.dot(mhbd, y.astype(mhbd.dtype),
                    preferred_element_type=jnp.float32)             # (g*Ho, Wo)
        if g == 1 or ho % 8 == 0:
            o_ref[pl.ds(off, g)] = z.reshape(g, ho, wo).astype(o_ref.dtype)
        else:
            zc = z.astype(o_ref.dtype)
            for c in range(g):                                      # static split
                o_ref[off + c] = zc[c * ho:(c + 1) * ho]

    if n_groups <= _UNROLL_GROUPS:
        # Fully unrolled: the LLO scheduler overlaps consecutive groups' MXU
        # pushes, drains, casts and stores.
        for i in range(n_groups):
            do_group(i)
    else:
        pl.loop(0, n_groups)(do_group)


def _vmem_limit_bytes():
    """Generation-aware scoped-VMEM limit (~3/4 of physical, capped at 96 MiB)."""
    try:
        cap = int(pltpu.get_tpu_info().vmem_capacity_bytes)
    except Exception:
        cap = 64 << 20  # conservative fallback: assume v7x-sized physical VMEM
    return int(min((cap // 4) * 3, 96 << 20))


def _pick_tiling(nc, h, w, ho, wo, itemsize, vmem_limit):
    """Pick (Bc, G, grid_steps, padded NC).

    Targets: ~4 MiB input DMA per step, an even grid (v7x's two TensorCores),
    a few steps per core when blocks stay >= ~1 MiB, Bc a multiple of the
    H-pass group, and a real VMEM-sum check against the scoped limit.
    """
    # H-pass channel group: fill the MXU M dim (~128 rows).  Needs H % 8 == 0
    # so the (G, H, W) -> (G*H, W) flatten stays a free reinterpretation.
    group = 1
    if h % 8 == 0 and ho > 0:
        group = max(1, min(8, -(-128 // ho)))

    # VMEM accounting: double-buffered in/out blocks + resident constants
    # (2 buffers each) + f32 matmul temporaries for one group + margin.
    const_b = 2 * (group * ho) * (group * h) * itemsize + 2 * w * wo * itemsize
    temp_b = 2 * group * (h + ho) * wo * 4
    margin = 4 << 20
    budget = max(vmem_limit - const_b - temp_b - margin, 1 << 20)
    per_c = 2 * h * w * itemsize + 2 * ho * wo * itemsize
    bc_vmem = max(1, budget // per_c)
    bc_dma = max(1, _DMA_TARGET_BYTES // max(h * w * itemsize, 1))
    bc_cap = int(max(1, min(bc_vmem, bc_dma, group * _MAX_GROUPS_PER_STEP, nc)))

    steps = max(2, pl.cdiv(nc, bc_cap))
    if steps % 2:
        steps += 1                       # even split across two TensorCores
    # Give each core a few pipelined steps while blocks stay >= ~1 MiB.
    while steps < 8 and pl.cdiv(nc, steps + 2) * h * w * itemsize >= (1 << 20):
        steps += 2

    bc = pl.cdiv(nc, steps)
    group = max(1, min(group, bc))
    bc = pl.cdiv(bc, group) * group      # Bc a multiple of the H-pass group
    return int(bc), int(group), int(steps), int(steps * bc)


def blurpool(x, *, pad_type="reflect", filt_size=4, stride=2, pad_off=0):
    """BlurPool forward. x: (N, C, H, W) -> (N, C, Ho, Wo)."""
    N, C, H, W = x.shape
    if filt_size == 1 and pad_off == 0:
        # PyTorch shortcut: plain strided subsampling (no filtering).
        return x[:, :, ::stride, ::stride]
    Mh, Ho = _blur_downsample_matrix(H, filt_size, stride, pad_off, pad_type)
    Mw, Wo = _blur_downsample_matrix(W, filt_size, stride, pad_off, pad_type)

    NC = N * C
    itemsize = jnp.dtype(x.dtype).itemsize
    vmem_limit = _vmem_limit_bytes()
    Bc, G, steps, NCp = _pick_tiling(NC, H, W, Ho, Wo, itemsize, vmem_limit)

    # Block-diagonal H-pass matrix: G channels handled by one MXU matmul.
    if G > 1:
        mh_bd = np.zeros((G * Ho, G * H), np.float32)
        for g in range(G):
            mh_bd[g * Ho:(g + 1) * Ho, g * H:(g + 1) * H] = Mh
    else:
        mh_bd = Mh
    # Constants in x.dtype: f32 input stays exact; bf16 input keeps the whole
    # W pass / intermediate / H pass at native bf16 MXU rate (review: v7x).
    mh_c = jnp.asarray(mh_bd, dtype=x.dtype)
    mwt_c = jnp.asarray(Mw.T, dtype=x.dtype)

    xf = x.reshape(NC, H, W)
    if NCp != NC:
        # Zero-pad awkward NC so the grid divides evenly (zeros keep the
        # block-diagonal H pass NaN/Inf free); padded rows are sliced off.
        xf = jnp.pad(xf, ((0, NCp - NC), (0, 0), (0, 0)))

    # TODO(synk): lane-dense output packing (block-diag Mw^T, channels on the
    # lane axis) for Wo < 128 needs an extra HBM transpose pass; not applied.
    kernel = functools.partial(_blurpool_kernel, group=G, h_out=Ho, w_out=Wo)
    out = pl.pallas_call(
        kernel,
        out_shape=jax.ShapeDtypeStruct((NCp, Ho, Wo), x.dtype),
        grid=(steps,),
        in_specs=[
            pl.BlockSpec((G * Ho, G * H), lambda i: (0, 0)),  # resident const
            pl.BlockSpec((W, Wo), lambda i: (0, 0)),          # resident const
            pl.BlockSpec((Bc, H, W), lambda i: (i, 0, 0)),
        ],
        out_specs=pl.BlockSpec((Bc, Ho, Wo), lambda i: (i, 0, 0)),
        compiler_params=pltpu.CompilerParams(
            dimension_semantics=("parallel",),
            vmem_limit_bytes=vmem_limit,
        ),
    )(mh_c, mwt_c, xf)
    if NCp != NC:
        out = out[:NC]
    return out.reshape(N, C, Ho, Wo)


def _reference(x, *, filt_size=4, stride=2, pad_off=0):
    # Pure-JAX reference matching F.conv2d(ReflectionPad2d(x), filt, stride, groups=C).
    a = jnp.asarray(_FILTER_TAPS[filt_size], dtype=jnp.float32)
    filt = a[:, None] * a[None, :]
    filt = filt / filt.sum()
    pb = int(1.0 * (filt_size - 1) / 2) + pad_off
    pa = int(np.ceil(1.0 * (filt_size - 1) / 2)) + pad_off
    xp = jnp.pad(x, ((0, 0), (0, 0), (pb, pa), (pb, pa)), mode="reflect")
    N, C, Hp, Wp = xp.shape
    Ho = (Hp - filt_size) // stride + 1
    Wo = (Wp - filt_size) // stride + 1
    out = jnp.zeros((N, C, Ho, Wo), jnp.float32)
    for u in range(filt_size):
        for v in range(filt_size):
            out = out + filt[u, v] * xp[
                :, :, u:u + stride * Ho:stride, v:v + stride * Wo:stride
            ]
    return out.astype(x.dtype)


if __name__ == "__main__":
    key = jax.random.PRNGKey(0)
    N, C, H, W = 2, 4, 16, 16
    x = jax.random.normal(key, (N, C, H, W), dtype=jnp.float32)

    out = jax.block_until_ready(blurpool(x))
    assert out.shape == (N, C, 8, 8), out.shape

    ref = jax.block_until_ready(_reference(x))
    np.testing.assert_allclose(np.asarray(out), np.asarray(ref), atol=1e-5, rtol=1e-5)

    print("KERNEL_OK")
</pallas_src>

<mosaic_0001>
module attributes {stable_mosaic.version = 11 : i64} {
  func.func @_blurpool_kernel(%arg0: i32, %arg1: memref<32x64xf32, #tpu.memory_space<vmem>>, %arg2: memref<16x8xf32, #tpu.memory_space<vmem>>, %arg3: memref<4x16x16xf32, #tpu.memory_space<vmem>>, %arg4: memref<4x8x8xf32, #tpu.memory_space<vmem>>) attributes {dimension_semantics = [#tpu.dimension_semantics<parallel>], iteration_bounds = array<i64: 2>, scalar_prefetch = 0 : i64, scratch_operands = 0 : i64, tpu.core_type = #tpu.core_type<tc>, window_params = [{pipeline_mode = #tpu.pipeline_mode<synchronous>, transform_indices = @transform_0, window_bounds = array<i64: 32, 64>}, {pipeline_mode = #tpu.pipeline_mode<synchronous>, transform_indices = @transform_1, window_bounds = array<i64: 16, 8>}, {transform_indices = @transform_2, window_bounds = array<i64: 4, 16, 16>}, {transform_indices = @transform_3, window_bounds = array<i64: 4, 8, 8>}]} {
    %c0 = arith.constant 0 : index
    %c0_0 = arith.constant 0 : index
    %0 = vector.load %arg1[%c0, %c0_0] : memref<32x64xf32, #tpu.memory_space<vmem>>, vector<32x64xf32>
    %c0_1 = arith.constant 0 : index
    %c0_2 = arith.constant 0 : index
    %1 = vector.load %arg2[%c0_1, %c0_2] : memref<16x8xf32, #tpu.memory_space<vmem>>, vector<16x8xf32>
    %c0_3 = arith.constant 0 : index
    %c0_4 = arith.constant 0 : index
    %c0_5 = arith.constant 0 : index
    %2 = vector.load %arg3[%c0_3, %c0_4, %c0_5] : memref<4x16x16xf32, #tpu.memory_space<vmem>>, vector<4x16x16xf32>
    %3 = vector.shape_cast %2 : vector<4x16x16xf32> to vector<64x16xf32>
    %cst = arith.constant dense<0.000000e+00> : vector<64x8xf32>
    %4 = tpu.matmul %3, %1, %cst {dimension_numbers = #tpu.dot_dimension_numbers<[1], [0], [0], [1], [0, 0, 1, 1], [], []>} : vector<64x16xf32>, vector<16x8xf32>, vector<64x8xf32> -> vector<64x8xf32>
    %cst_6 = arith.constant dense<0.000000e+00> : vector<32x8xf32>
    %5 = tpu.matmul %0, %4, %cst_6 {dimension_numbers = #tpu.dot_dimension_numbers<[1], [0], [0], [1], [0, 0, 1, 1], [], []>} : vector<32x64xf32>, vector<64x8xf32>, vector<32x8xf32> -> vector<32x8xf32>
    %6 = vector.shape_cast %5 : vector<32x8xf32> to vector<4x8x8xf32>
    %c0_7 = arith.constant 0 : index
    %c0_8 = arith.constant 0 : index
    %c0_9 = arith.constant 0 : index
    %7 = vector.load %arg4[%c0_7, %c0_8, %c0_9] : memref<4x8x8xf32, #tpu.memory_space<vmem>>, vector<4x8x8xf32>
    tpu.vector_store %arg4[%c0_7, %c0_8, %c0_9], %6 {strides = array<i32>} : memref<4x8x8xf32, #tpu.memory_space<vmem>>, vector<4x8x8xf32>,
    return
  }
  func.func @transform_0(%arg0: i32) -> (i32, i32) {
    %c0_i32 = arith.constant 0 : i32
    %c0_i32_0 = arith.constant 0 : i32
    %c0_i32_1 = arith.constant 0 : i32
    return %c0_i32, %c0_i32_0 : i32, i32
  }
  func.func @transform_1(%arg0: i32) -> (i32, i32) {
    %c0_i32 = arith.constant 0 : i32
    %c0_i32_0 = arith.constant 0 : i32
    %c0_i32_1 = arith.constant 0 : i32
    return %c0_i32, %c0_i32_0 : i32, i32
  }
  func.func @transform_2(%arg0: i32) -> (i32, i32, i32) {
    %c0_i32 = arith.constant 0 : i32
    %c0_i32_0 = arith.constant 0 : i32
    %c0_i32_1 = arith.constant 0 : i32
    return %arg0, %c0_i32, %c0_i32_0 : i32, i32, i32
  }
  func.func @transform_3(%arg0: i32) -> (i32, i32, i32) {
    %c0_i32 = arith.constant 0 : i32
    %c0_i32_0 = arith.constant 0 : i32
    %c0_i32_1 = arith.constant 0 : i32
    return %arg0, %c0_i32, %c0_i32_0 : i32, i32, i32
  }
}

</mosaic_0001>

<bundles_post_ra>
// kernel: tpu_custom_call.1
= control target key start
LH: loop header
LB: loop body
LE: loop exit
PB: predicated region body
PF: predicated region fallthrough
CT: control target
= control target key end

     0   :  { %8 = vsyncpa [#allocation3], 0  ;;  %s1109_s0 = inlined_call_operand.hbm [shape: f32[32,64], index: 0, kind: input, shape index: {}]   ;;  %s1110_s1 = inlined_call_operand.vmem [shape: f32[16,8], index: 1, kind: input, shape index: {}]   ;;  %s1111_s2 = inlined_call_operand.hbm [shape: f32[8,16,16], index: 2, kind: input, shape index: {}]   ;;  %s1112_s3 = inlined_call_operand.hbm [shape: f32[8,8,8], index: 3, kind: output, shape index: {}]  }
   0x1   :  { %9 = vsyncpa [#allocation6], 0 }
   0x2   :  { %11 = vsyncpa [#allocation6 + $0x1], 0 }
   0x3   :  { %12 = vsyncpa [#allocation4], 0 }
   0x4   :  { %14 = vsyncpa [#allocation4 + $0x1], 0  ;;  %s883_s12 = smov 0   ;;  %s885_s13 = smov 0  }
   0x5   :  { %s887_s14 = smov 0   ;;  %s889_s15 = smov 0  }
   0x6 LB: > { %s904_s16 = sadd.s32 4294967295, %s854_s15   ;;  %s553_s17 = sadd.s32 4294967294, %s854_s15   ;;  %s854_s15 = sphi %s889_s15, %s1132_s15   ;;  %s850_s14 = sphi %s887_s14, %s1131_s14   ;;  %s846_s13 = sphi %s885_s13, %s1130_s13   ;;  %s842_s12 = sphi %s883_s12, %s1129_s12  }
   0x7   : > { %p82_p0 = scmp.ne.s32.totalorder %s846_s13, %s842_s12  ;;  %p1113_p1 = scmp.eq.s32.totalorder %s904_s16, 0 }
   0x8   : > { %p112_p3 = scmp.eq.s32.totalorder %s553_s17, 1  ;;  %p554_p5 = scmp.ge.s32.totalorder %s854_s15, 1 }
   0x9   : > { %p913_p4 = por %p1113_p1, %p82_p0  ;;  %p119_p7 = scmp.lt.s32.totalorder %s854_s15, 3 }
   0xa   : > { %p918_p6 = por %p112_p3, %p82_p0  ;;  %s856_s21 = smov [#allocation2]  }
   0xb   : > { %s1116_s18 = scalar_select %p913_p4, 1, 0 }
   0xc   : > { %s1117_s19 = scalar_select %p918_p6, 1, 0 }
   0xd   : > { %p923_p8 = pnand %p554_p5, %p119_p7  ;;  %s131_s22 = sshll.u32 %s856_s21, 4  ;;  %s927_s22 = int_to_ptr.vmem [resolvable:$true] %s131_s22 }
   0xe   : > { %s939_s24 = sadd.s32 1, %s854_s15   ;;  %s69_s25 = sadd.s32 1, %s850_s14 }
   0xf   : > { %s1118_s20 = scalar_select %p923_p8, 1, 0 }
  0x10   : > { %p673_p9 = pneg %p923_p8  ;;  %s66_s26 = ssub.s32 %s854_s15, %s939_s24 }
  0x11   : > { %s726_s29 = scalar_lea.hbm %s1109_s0, 512 }
  0x12   : > { %p934_p11 = pnand %p673_p9, %p1113_p1  ;;  %p727_p12 = scmp.ne.s32.totalorder %s1109_s0, %s726_s29 }
  0x13   : > { %p733_p5 = scmp.lt.u32.totalorder %s726_s29, %s1109_s0 }
  0x14   : > { %p728_p13 = pneg %p934_p11 }
  0x16   : > { %p729_p0 = pnand %p728_p13, %p727_p12 }
  0x18   : > { %p730_p3 = pneg %p729_p0 }
  0x1a   : > { %p735_p7 = pnand %p733_p5, %p730_p3 }
  0x1c   : > { %738 = shalt.err (!%p735_p7)
}
  0x1d   : > { %s739_s7 = scalar_lea.vmem %s927_s22, 512  ;;  %p747_p2 = scmp.lt.s32.totalorder %s927_s22, %s927_s22 }
  0x1e   : > { %p740_p9 = scmp.ne.s32.totalorder %s927_s22, %s739_s7  ;;  %p748_p6 = scmp.lt.s32.totalorder %s739_s7, %s739_s7 }
  0x20   : > { %p742_p10 = pnand %p740_p9, %p728_p13  ;;  %p749_p4 = por %p748_p6, %p747_p2 }
  0x22   : > { %p743_p1 = pneg %p742_p10 }
  0x24   : > { %p750_p8 = pnand %p749_p4, %p743_p1 }
  0x26   : > { %753 = shalt.err (!%p750_p8)
}
  0x27   : > { %s857_s8 = smov 128   ;;  %s858_s9 = smov 8  }
  0x28   : > { %676 = dma.hbm_to_vmem [thread:$0]  (!%p934_p11), %s1109_s0, 512, %s927_s22, [#allocation3], %s857_s8, %s857_s8, %s858_s9  }
  0x29   : > { %p67_p1 = scmp.eq.s32.totalorder %s66_s26, 0  ;;  %p76_p2 = scmp.ne.s32.totalorder %s850_s14, %s846_s13 }
  0x2a   : > { %p77_p4 = scmp.eq.s32.totalorder %s854_s15, 0  ;;  %p686_p6 = scmp.lt.s32.totalorder %s854_s15, 2 }
  0x2b   : > { %s973_s17 = scalar_select %p67_p1, %s850_s14, %s69_s25  }
  0x2c   : > { %p78_p8 = por %p77_p4, %p76_p2  ;;  %p1120_p10 = scmp.eq.s32.totalorder %s904_s16, 1 }
  0x2d   : > { %s148_s23 = sand.u32 1, %s850_s14   ;;  %s583_s27 = sshll.u32 %s854_s15, 10 }
  0x2e   : > { %p977_p12 = por %p1120_p10, %p76_p2  ;;  %s557_s28 = sshll.u32 %s148_s23, 6 }
  0x2f   : > { %s986_s4 = scalar_lea.hbm %s1111_s2, %s583_s27  ;;  %s152_s22 = scalar_lea.vmem [#allocation5], %s557_s28 }
  0x30   : > { %s160_s25 = sshll.u32 %s152_s22, 4  ;;  %p988_p11 = pnand %p686_p6, %p78_p8  ;;  %s992_s25 = int_to_ptr.vmem [resolvable:$true] %s160_s25 }
  0x31   : > { %s994_s5 = scalar_lea.sflag [#allocation6], %s148_s23  ;;  %s754_s6 = scalar_lea.hbm %s986_s4, 1024 }
  0x32   : > { %p755_p13 = scmp.ne.s32.totalorder %s986_s4, %s754_s6  ;;  %p756_p0 = pneg %p988_p11 }
  0x33   : > { %s759_s11 = scalar_lea.hbm %s1111_s2, 2048  ;;  %p760_p7 = scmp.lt.u32.totalorder %s986_s4, %s1111_s2 }
  0x34   : > { %p757_p3 = pnand %p756_p0, %p755_p13  ;;  %p761_p9 = scmp.lt.u32.totalorder %s759_s11, %s754_s6 }
  0x35   : > { %p763_p2 = scmp.lt.u32.totalorder %s754_s6, %s986_s4 }
  0x36   : > { %p758_p5 = pneg %p757_p3  ;;  %p762_p1 = por %p761_p9, %p760_p7 }
  0x38   : > { %p764_p4 = por %p763_p2, %p762_p1 }
  0x3a   : > { %p765_p6 = pnand %p764_p4, %p758_p5 }
  0x3c   : > { %768 = shalt.err (!%p765_p6)
}
  0x3d   : > { %s769_s23 = scalar_lea.vmem %s992_s25, 1024  ;;  %s859_s29 = smov [#allocation5]  }
  0x3e   : > { %p770_p8 = scmp.ne.s32.totalorder %s992_s25, %s769_s23  ;;  %s774_s30 = sshll.u32 %s859_s29, 4  ;;  %s775_s30 = int_to_ptr.vmem [resolvable:$false] %s774_s30 }
  0x3f   : > { %s776_s22 = scalar_lea.vmem %s775_s30, 2048  ;;  %p777_p3 = scmp.lt.s32.totalorder %s992_s25, %s775_s30 }
  0x40   : > { %p772_p10 = pnand %p770_p8, %p756_p0  ;;  %p778_p7 = scmp.lt.s32.totalorder %s776_s22, %s769_s23 }
  0x42   : > { %p773_p13 = pneg %p772_p10  ;;  %p779_p9 = por %p778_p7, %p777_p3 }
  0x44   : > { %p780_p1 = pnand %p779_p9, %p773_p13 }
  0x46   : > { %783 = shalt.err (!%p780_p1)
}
  0x47   : > { %680 = dma.hbm_to_vmem [thread:$0]  (!%p988_p11), %s986_s4, 1024, %s992_s25, %s994_s5, %s857_s8, %s857_s8, %s858_s9  }
  0x48   : > { %p1123_p0 = scmp.ne.s32.totalorder %s1118_s20, 0 }
  0x49   : > { %p1124_p5 = scmp.eq.s32.totalorder (!%p1123_p0), %s904_s16, 0 }
  0x4a   : > { %172 = sbr.rel (%p1123_p0) target bundleno = 556 (0x22c), region = 32 }
  0x51   : > { %829 = dma.done.wait (%p1124_p5), [#allocation3], 512   ;;  %p1125_p2 = pmov %p1124_p5 }
  0x52   : > { %s1032_s6 = sand.u32 1, %s846_s13   ;;  %p1126_p4 = scmp.ne.s32.totalorder %s1116_s18, 0 }
  0x53   : > { %831 = vsyncadd (%p1125_p2), [#allocation3], 4294966784  ;;  %s563_s26 = sshll.u32 %s1032_s6, 6  ;;  %s179_s7 = scalar_lea.sflag [#allocation6], %s1032_s6 }
  0x54   : > { %s182_s10 = scalar_lea.vmem [#allocation5], %s563_s26 }
  0x55   : > { %833 = dma.done.wait (%p1126_p4), %s179_s7, 1024  }
  0x56   : > { %835 = vsyncadd (%p1126_p4), %s179_s7, 4294966272  ;;  %vm221_vm0 = vcmask 130048   ;;  %v211_v0 = vld [vmem:[%s1110_s1] sm:$0xff]  ;;  %v212_v1 = vld [vmem:[%s1110_s1 + $0x8] sm:$0xff]  ;;  %vm351_vm1 = vcmask 523264   ;;  %s564_s18 = sshll.u32 %s1032_s6, 5 }
  0x57   : > { %v213_v2 = vld [vmem:[%s182_s10] sm:$0xff]  ;;  %v645_v3 = vpack.c.bf16 %v212_v1, %v211_v0  ;;  %v214_v4 = vld [vmem:[%s182_s10 + $0x8] sm:$0xff]  ;;  %v215_v5 = vld [vmem:[%s182_s10 + $0x10] sm:$0xff]  ;;  %vm449_vm2 = vcmask 64512   ;;  %s204_s25 = scalar_lea.vmem [#allocation7], %s564_s18  ;;  %s584_s11 = sshll.u32 %s904_s16, 9 }
  0x58   : > { %611 = vmatprep.mubr.msk.f32.mxu0 %vm221_vm0, %v213_v2  ;;  %v216_v6 = vld [vmem:[%s182_s10 + $0x18] sm:$0xff]  ;;  %v217_v7 = vld [vmem:[%s182_s10 + $0x20] sm:$0xff]  ;;  %v218_v8 = vld [vmem:[%s182_s10 + $0x28] sm:$0xff]  ;;  %s468_s5 = sshll.u32 %s204_s25, 4  ;;  %s1065_s23 = scalar_lea.hbm %s1112_s3, %s584_s11  ;;  %s1060_s5 = int_to_ptr.vmem [resolvable:$true] %s468_s5 }
  0x59   : > { %646 = vmatprep.subr.bf16.mxu0 %v645_v3  ;;  %v219_v9 = vld [vmem:[%s182_s10 + $0x30] sm:$0xff]  ;;  %v220_v10 = vld [vmem:[%s182_s10 + $0x38] sm:$0xff]  ;;  %v207_v11 = vld [vmem:[#allocation2] sm:$0xff]  ;;  %s455_s29 = scalar_lea.sflag [#allocation4], %s1032_s6  ;;  %s784_s30 = scalar_lea.vmem %s1060_s5, 512 }
  0x5a   : > { %648 = vmatpush3.bf16.msra.mxu0 %v645_v3  ;;  %639 = vmatprep.mubr.msk.f32.mxu1 %vm351_vm1, %v207_v11  ;;  %v208_v24 = vld [vmem:[#allocation2 + $0x8] sm:$0xff]  ;;  %v209_v25 = vld [vmem:[#allocation2 + $0x10] sm:$0xff]  ;;  %v210_v26 = vld [vmem:[#allocation2 + $0x18] sm:$0xff]  ;;  %p785_p11 = scmp.ne.s32.totalorder %s1060_s5, %s784_s30  ;;  %s860_s16 = smov [#allocation7]  }
  0x5b   : > { %s788_s22 = sshll.u32 %s860_s16, 4  ;;  %s789_s22 = int_to_ptr.vmem [resolvable:$false] %s788_s22 }
  0x5c   : > { %p786_p6 = pnand %p785_p11, %p977_p12  ;;  %s790_s26 = scalar_lea.vmem %s789_s22, 1024 }
  0x5d   : > { %612 = vmatmul.mubr.msk.f32.vlgmr.msra.gmra.mrb[0].mxu0 %vm221_vm0, %v214_v4  ;;  %p791_p10 = scmp.lt.s32.totalorder %s1060_s5, %s789_s22  ;;  %p792_p13 = scmp.lt.s32.totalorder %s790_s26, %s784_s30 }
  0x5e   : > { %614 = vmatprep.mubr.msk.f32.mxu0 %vm221_vm0, %v215_v5  ;;  %p787_p8 = pneg %p786_p6 }
  0x5f   : > { %p793_p3 = por %p792_p13, %p791_p10 }
  0x61   : > { %615 = vmatmul.mubr.msk.f32.gmra.mrb[2].mxu0 %vm221_vm0, %v216_v6  ;;  %p794_p7 = pnand %p793_p3, %p787_p8 }
  0x62   : > { %617 = vmatprep.mubr.msk.f32.mxu0 %vm221_vm0, %v217_v7 }
  0x65   : > { %618 = vmatmul.mubr.msk.f32.gmra.mrb[4].mxu0 %vm221_vm0, %v218_v8 }
  0x66   : > { %620 = vmatprep.mubr.msk.f32.mxu0 %vm221_vm0, %v219_v9 }
  0x69   : > { %621 = vmatmul.mubr.msk.f32.gmra.mrb[6].mxu0 %vm221_vm0, %v220_v10 }
 0x130   : > { %v613_v12 = vpop.f32.mrb[0].mxu0 }
 0x131   : > { %v312_v13 = vpop.f32.mrb[1].mxu0 }
 0x132   : > { %v649_v14 = vpack.c.bf16 %v613_v12, %v312_v13 }
 0x134   : > { %v616_v15 = vpop.f32.mrb[2].mxu0  ;;  %650 = vmatprep.subr.bf16.mxu1 %v649_v14 }
 0x135   : > { %v322_v16 = vpop.f32.mrb[3].mxu0  ;;  %652 = vmatpush3.bf16.msra.mxu1 %v649_v14 }
 0x136   : > { %v653_v17 = vpack.c.bf16 %v616_v15, %v322_v16 }
 0x138   : > { %v619_v18 = vpop.f32.mrb[4].mxu0  ;;  %654 = vmatprep.subr.bf16.mxu1 %v653_v17 }
 0x139   : > { %v332_v19 = vpop.f32.mrb[5].mxu0  ;;  %656 = vmatpush3.bf16.msra.mxu1 %v653_v17 }
 0x13a   : > { %v657_v20 = vpack.c.bf16 %v619_v18, %v332_v19 }
 0x13c   : > { %v622_v21 = vpop.f32.mrb[6].mxu0  ;;  %658 = vmatprep.subr.bf16.mxu1 %v657_v20 }
 0x13d   : > { %v342_v22 = vpop.f32.mrb[7].mxu0  ;;  %660 = vmatpush3.bf16.msra.mxu1 %v657_v20 }
 0x13e   : > { %v661_v23 = vpack.c.bf16 %v622_v21, %v342_v22 }
 0x140   : > { %662 = vmatprep.subr.bf16.mxu1 %v661_v23 }
 0x141   : > { %664 = vmatpush3.bf16.msra.mxu1 %v661_v23 }
 0x144   : > { %640 = vmatmul.mubr.msk.f32.vlgmr.msra.gmra.mrb[0].mxu1 %vm351_vm1, %v208_v24 }
 0x145   : > { %642 = vmatprep.mubr.msk.f32.mxu1 %vm351_vm1, %v209_v25 }
 0x148   : > { %643 = vmatmul.mubr.msk.f32.gmra.mrb[2].mxu1 %vm351_vm1, %v210_v26 }
 0x217   : > { %v641_v27 = vpop.f32.mrb[0].mxu1 }
 0x218   : > { %451 = vst.msk [vmem:[%s204_s25 + $0x8] sm:$0xff] %vm449_vm2, %v641_v27  ;;  %v430_v28 = vpop.f32.mrb[1].mxu1 }
 0x219   : > { %450 = vst.msk [vmem:[%s204_s25] sm:$0xff] %vm449_vm2, %v430_v28 }
 0x21b   : > { %v644_v29 = vpop.f32.mrb[2].mxu1 }
 0x21c   : > { %453 = vst.msk [vmem:[%s204_s25 + $0x18] sm:$0xff] %vm449_vm2, %v644_v29  ;;  %v440_v30 = vpop.f32.mrb[3].mxu1 }
 0x21d   : > { %452 = vst.msk [vmem:[%s204_s25 + $0x10] sm:$0xff] %vm449_vm2, %v440_v30 }
 0x21e   : > { %797 = shalt.err (!%p794_p7)
}
 0x21f   : > { %s798_s7 = scalar_lea.hbm %s1065_s23, 512  ;;  %s802_s8 = scalar_lea.hbm %s1112_s3, 1024 }
 0x220   : > { %p799_p9 = scmp.ne.s32.totalorder %s1065_s23, %s798_s7  ;;  %p803_p5 = scmp.lt.u32.totalorder %s1065_s23, %s1112_s3 }
 0x221   : > { %p804_p2 = scmp.lt.u32.totalorder %s802_s8, %s798_s7  ;;  %p806_p11 = scmp.lt.u32.totalorder %s798_s7, %s1065_s23 }
 0x222   : > { %p800_p1 = pnand %p799_p9, %p977_p12 }
 0x223   : > { %p805_p4 = por %p804_p2, %p803_p5 }
 0x224   : > { %p801_p0 = pneg %p800_p1 }
 0x225   : > { %p807_p6 = por %p806_p11, %p805_p4 }
 0x227   : > { %p808_p8 = pnand %p807_p6, %p801_p0 }
 0x229   : > { %811 = shalt.err (!%p808_p8)
}
 0x22a   : > { %s861_s18 = smov 128   ;;  %s862_s25 = smov 8  }
 0x22b   : > { %671 = dma.vmem_to_hbm [thread:$0]  (%p977_p12), %s1060_s5, 512, %s1065_s23, %s455_s29, %s861_s18, %s861_s18, %s862_s25  }
 0x22c PF: > { %s483_s11 = sand.u32 1, %s842_s12   ;;  %p1127_p10 = scmp.ne.s32.totalorder %s1117_s19, 0 }
 0x22d   : > { %p1128_p13 = scmp.ge.s32.totalorder %s854_s15, 2  ;;  %s484_s27 = scalar_lea.sflag [#allocation4], %s483_s11 }
 0x22f   : > { %p682_p3 = pnand %p1128_p13, %p1127_p10 }
 0x231   : > { %837 = dma.done.wait (!%p682_p3), %s484_s27, 512  }
 0x232   : > { %839 = vsyncadd (!%p682_p3), %s484_s27, 4294966784  ;;  %p17_p7 = scmp.ge.s32.totalorder %s939_s24, 4   ;;  %s1129_s12 = smov %s846_s13 }
 0x233   : > { %s1130_s13 = smov %s850_s14  ;;  %s1131_s14 = smov %s973_s17 }
 0x234   : > { %s1132_s15 = smov %s939_s24  ;;  %19 = sbr.rel (!%p17_p7) target bundleno = 6 (0x6), region = 82 }
 0x23b   :  { %489 = vsyncpa [#allocation3], 1 }
 0x23c   :  { %491 = vsyncpa [#allocation3 + $0x1], 1 }
 0x23d   :  { %492 = vsyncpa [#allocation6], 1 }
 0x23e   :  { %494 = vsyncpa [#allocation6 + $0x1], 1 }
 0x23f   :  { %495 = vsyncpa [#allocation4], 1 }
 0x240   :  { %497 = vsyncpa [#allocation4 + $0x1], 1 }

</bundles_post_ra>
